<compile_context>
chip_gen: v7x
topology: tpu7x:2x2x1
jax: 0.10.0
libtpu: 0.0.40
codegen_flags: <defaults>
</compile_context>

<pallas_src>
import functools

import jax
import jax.numpy as jnp
from jax.experimental import pallas as pl
from jax.experimental.pallas import tpu as pltpu

_INV_SQRT2 = 0.7071067811865476
_BN_EPS = 1e-5


def _gelu(x):
    # Exact GELU (PyTorch nn.GELU default): 0.5*x*(1+erf(x/sqrt(2))).
    # TODO(synk): tanh-approx GELU would route through the EUP and relieve the
    # VPU, but it changes numerics vs nn.GELU(), so keep the exact form.
    return 0.5 * x * (1.0 + jax.lax.erf(x * _INV_SQRT2))


def rbf_accum_kernel(x_ref, w_ref, b_ref, s_ref, tsum_ref, tm2_ref, *,
                     rank, c, hw, tile_hw, inv_two_sigma_sq):
    """One lane-dense pixel tile of one image.

    x_ref:    (1, C, TM)        channels on sublanes, pixels on lanes
    w_ref:    (2*rank*C, C)     rows = [Wa_0..Wa_{r-1} ; Wb_0..Wb_{r-1}]
    b_ref:    (2*rank*C, 1)
    s_ref:    (1, C, TM)        S = sum_r (gelu(A_r)-gelu(B_r))^2 / (2*sigma^2)
    tsum_ref: (1, 1, C, 1)      per-tile sum of S over valid pixels
    tm2_ref:  (1, 1, C, 1)      per-tile sum of (S - tile_mean)^2 over valid px
    """
    x = x_ref[0]                                            # (C, TM)
    # Single wide MXU call for all 2*rank 1x1 convs; output stays lane-dense.
    y = jnp.dot(w_ref[...], x, preferred_element_type=jnp.float32) + b_ref[...]
    g = _gelu(y)                                            # full-vreg erf-GELU
    acc = None
    for r in range(rank):                                   # rank small & static
        d = g[r * c:(r + 1) * c, :] - g[(rank + r) * c:(rank + r + 1) * c, :]
        acc = d * d if acc is None else acc + d * d
    s = acc * inv_two_sigma_sq
    s_ref[0] = s

    # Per-tile BatchNorm partial statistics (mask out pad lanes of the last
    # hw tile; within-tile centering keeps the variance numerically safe).
    if hw % tile_hw:
        t = pl.program_id(1)
        lane = jax.lax.broadcasted_iota(jnp.int32, (c, tile_hw), 1)
        mask = (lane + t * tile_hw) < hw
        cnt = jnp.minimum(tile_hw, hw - t * tile_hw).astype(jnp.float32)
        s_m = jnp.where(mask, s, 0.0)
        sum_i = jnp.sum(s_m, axis=1, keepdims=True)         # (C, 1)
        mean_i = sum_i / cnt
        dev = jnp.where(mask, s - mean_i, 0.0)
    else:
        sum_i = jnp.sum(s, axis=1, keepdims=True)           # (C, 1)
        mean_i = sum_i * (1.0 / tile_hw)
        dev = s - mean_i
    tsum_ref[0, 0] = sum_i
    tm2_ref[0, 0] = jnp.sum(dev * dev, axis=1, keepdims=True)


def bn_exp_kernel(s_ref, scale_ref, shift_ref, o_ref):
    # BatchNorm (gamma=1, beta=0) + exp(-.) folded: exp(-(s-mean)*istd)
    #   == exp(shift - s*scale) with scale=istd, shift=mean*istd.
    o_ref[0] = jnp.exp(shift_ref[...] - s_ref[0] * scale_ref[...])


def _pick_tile_hw(hw, c, rank, budget_bytes=20 * 1024 * 1024):
    """Largest tile that keeps double-buffered blocks + intermediates well
    under the v7x 32 MiB scoped-VMEM default (v7x: 64 MiB physical)."""
    def step_bytes(tm):
        return 4 * (2 * c * tm                 # x block (double-buffered)
                    + 2 * c * tm               # S block (double-buffered)
                    + 2 * 2 * rank * c * c     # fused weights
                    + 4 * 2 * rank * c * tm)   # y/g/diff intermediates headroom
    if step_bytes(hw) <= budget_bytes:
        return hw                              # full-extent block, no padding
    tm = 2048
    while tm > 128 and step_bytes(tm) > budget_bytes:
        tm //= 2
    return tm


@functools.partial(jax.jit, static_argnames=("sigma", "tile_hw"))
def rbf_kernel_forward(x, wa, ba, wb, bb, *, sigma=1.0, tile_hw=None):
    """x: (N, C, H, W) f32.  wa/wb: (rank, C, C) 1x1-conv weights (out, in).
    ba/bb: (rank, C) biases.  Returns (N, C, H, W)."""
    n, c, h, w = x.shape
    rank = wa.shape[0]
    hw = h * w

    if tile_hw is None:
        tile_hw = _pick_tile_hw(hw, c, rank)
    else:
        tile_hw = int(tile_hw)
        if tile_hw >= hw:
            tile_hw = hw
        else:
            assert tile_hw % 128 == 0, "tile_hw must be a multiple of 128"

    num_t = pl.cdiv(hw, tile_hw)
    hw_pad = num_t * tile_hw

    # Free reshape: NCHW is already (batch, sublane=C, lane=H*W) — no transpose.
    x3 = x.reshape(n, c, hw).astype(jnp.float32)
    if hw_pad != hw:
        x3 = jnp.pad(x3, ((0, 0), (0, 0), (0, hw_pad - hw)))

    # Fuse all 2*rank conv1x1 weights/biases into one wide matrix.
    w_all = jnp.concatenate([wa, wb], axis=0).reshape(2 * rank * c, c).astype(jnp.float32)
    b_all = jnp.concatenate([ba, bb], axis=0).reshape(2 * rank * c, 1).astype(jnp.float32)

    inv_two_sigma_sq = 1.0 / (2.0 * float(sigma) ** 2)
    kern = functools.partial(rbf_accum_kernel, rank=rank, c=c, hw=hw,
                             tile_hw=tile_hw, inv_two_sigma_sq=inv_two_sigma_sq)

    s_pad, tsum, tm2 = pl.pallas_call(
        kern,
        out_shape=(
            jax.ShapeDtypeStruct((n, c, hw_pad), jnp.float32),
            jax.ShapeDtypeStruct((n, num_t, c, 1), jnp.float32),
            jax.ShapeDtypeStruct((n, num_t, c, 1), jnp.float32),
        ),
        grid=(n, num_t),
        in_specs=[
            pl.BlockSpec((1, c, tile_hw), lambda i, t: (i, 0, t)),
            pl.BlockSpec((2 * rank * c, c), lambda i, t: (0, 0)),
            pl.BlockSpec((2 * rank * c, 1), lambda i, t: (0, 0)),
        ],
        out_specs=(
            pl.BlockSpec((1, c, tile_hw), lambda i, t: (i, 0, t)),
            pl.BlockSpec((1, 1, c, 1), lambda i, t: (i, t, 0, 0)),
            pl.BlockSpec((1, 1, c, 1), lambda i, t: (i, t, 0, 0)),
        ),
        compiler_params=pltpu.CompilerParams(
            dimension_semantics=("parallel", "parallel")),
    )(x3, w_all, b_all)

    # Tiny XLA glue over (N, T, C) partials: exact parallel-variance combine
    # (law of total variance), i.e. training-mode BatchNorm2d batch stats.
    counts = [tile_hw] * (num_t - 1) + [hw - (num_t - 1) * tile_hw]
    counts = jnp.asarray(counts, jnp.float32).reshape(1, num_t, 1, 1)
    total = float(n * hw)
    sum_all = jnp.sum(tsum, axis=(0, 1))                          # (C, 1)
    mean = sum_all / total
    mean_it = tsum / counts                                       # (N, T, C, 1)
    m2_all = (jnp.sum(tm2, axis=(0, 1))
              + jnp.sum(counts * jnp.square(mean_it - mean), axis=(0, 1)))
    var = m2_all / total
    istd = jax.lax.rsqrt(var + _BN_EPS)
    scale = istd                                                  # (C, 1)
    shift = mean * istd                                           # (C, 1)

    out_pad = pl.pallas_call(
        bn_exp_kernel,
        out_shape=jax.ShapeDtypeStruct((n, c, hw_pad), jnp.float32),
        grid=(n, num_t),
        in_specs=[
            pl.BlockSpec((1, c, tile_hw), lambda i, t: (i, 0, t)),
            pl.BlockSpec((c, 1), lambda i, t: (0, 0)),
            pl.BlockSpec((c, 1), lambda i, t: (0, 0)),
        ],
        out_specs=pl.BlockSpec((1, c, tile_hw), lambda i, t: (i, 0, t)),
        input_output_aliases={0: 0},   # write BN+exp result in place of S
        compiler_params=pltpu.CompilerParams(
            dimension_semantics=("parallel", "parallel")),
    )(s_pad, scale, shift)

    out = out_pad[:, :, :hw] if hw_pad != hw else out_pad
    return out.reshape(n, c, h, w)


def rbf_reference(x, wa, ba, wb, bb, sigma=1.0):
    """Pure-JAX reference mirroring the PyTorch forward (training-mode BN)."""
    x_nhwc = jnp.transpose(x, (0, 2, 3, 1))
    exp = jnp.zeros_like(x_nhwc)
    for r in range(wa.shape[0]):
        ya = jnp.einsum("nhwc,oc->nhwo", x_nhwc, wa[r]) + ba[r]
        yb = jnp.einsum("nhwc,oc->nhwo", x_nhwc, wb[r]) + bb[r]
        exp = exp + (_gelu(ya) - _gelu(yb)) ** 2 / (2.0 * sigma ** 2)
    mean = jnp.mean(exp, axis=(0, 1, 2))
    var = jnp.mean((exp - mean) ** 2, axis=(0, 1, 2))
    out = jnp.exp(-((exp - mean) / jnp.sqrt(var + _BN_EPS)))
    return jnp.transpose(out, (0, 3, 1, 2))


if __name__ == "__main__":
    N, C, H, W = 2, 8, 16, 16
    RANK = 3
    SIGMA = 1.0

    key = jax.random.PRNGKey(0)
    kx, kwa, kba, kwb, kbb = jax.random.split(key, 5)

    x = jax.random.normal(kx, (N, C, H, W), jnp.float32)
    # Deterministic synthetic Conv2d(C, C, kernel_size=1) parameters per rank.
    wa = jax.random.normal(kwa, (RANK, C, C), jnp.float32) * 0.3
    ba = jax.random.normal(kba, (RANK, C), jnp.float32) * 0.1
    wb = jax.random.normal(kwb, (RANK, C, C), jnp.float32) * 0.3
    bb = jax.random.normal(kbb, (RANK, C), jnp.float32) * 0.1

    # tile_hw=128 -> each 256-pixel image split across 2 hw tiles, exercising
    # the multi-tile statistics combine; grid is (N=2, T=2), all parallel.
    out = rbf_kernel_forward(x, wa, ba, wb, bb, sigma=SIGMA, tile_hw=128)
    out = jax.block_until_ready(out)

    ref = rbf_reference(x, wa, ba, wb, bb, sigma=SIGMA)
    assert out.shape == (N, C, H, W)
    assert jnp.allclose(out, ref, rtol=1e-3, atol=1e-3), "mismatch vs reference"

    print("KERNEL_OK")
</pallas_src>

<mosaic_0001>
module attributes {stable_mosaic.version = 11 : i64} {
  func.func @bn_exp_kernel(%arg0: i32, %arg1: i32, %arg2: memref<1x8x128xf32, #tpu.memory_space<vmem>>, %arg3: memref<8x1xf32, #tpu.memory_space<vmem>>, %arg4: memref<8x1xf32, #tpu.memory_space<vmem>>, %arg5: memref<1x8x128xf32, #tpu.memory_space<vmem>>) attributes {dimension_semantics = [#tpu.dimension_semantics<parallel>, #tpu.dimension_semantics<parallel>], iteration_bounds = array<i64: 2, 2>, scalar_prefetch = 0 : i64, scratch_operands = 0 : i64, tpu.core_type = #tpu.core_type<tc>, window_params = [{transform_indices = @transform_0, window_bounds = array<i64: 1, 8, 128>}, {pipeline_mode = #tpu.pipeline_mode<synchronous>, transform_indices = @transform_1, window_bounds = array<i64: 8, 1>}, {pipeline_mode = #tpu.pipeline_mode<synchronous>, transform_indices = @transform_2, window_bounds = array<i64: 8, 1>}, {transform_indices = @transform_3, window_bounds = array<i64: 1, 8, 128>}]} {
    %c0 = arith.constant 0 : index
    %c0_0 = arith.constant 0 : index
    %0 = vector.load %arg4[%c0, %c0_0] : memref<8x1xf32, #tpu.memory_space<vmem>>, vector<8x1xf32>
    %c0_1 = arith.constant 0 : index
    %c0_2 = arith.constant 0 : index
    %c0_3 = arith.constant 0 : index
    %1 = vector.load %arg2[%c0_1, %c0_2, %c0_3] : memref<1x8x128xf32, #tpu.memory_space<vmem>>, vector<1x8x128xf32>
    %2 = vector.shape_cast %1 : vector<1x8x128xf32> to vector<8x128xf32>
    %c0_4 = arith.constant 0 : index
    %c0_5 = arith.constant 0 : index
    %3 = vector.load %arg3[%c0_4, %c0_5] : memref<8x1xf32, #tpu.memory_space<vmem>>, vector<8x1xf32>
    %4 = vector.broadcast %3 : vector<8x1xf32> to vector<8x128xf32>
    %5 = arith.mulf %2, %4 : vector<8x128xf32>
    %6 = vector.broadcast %0 : vector<8x1xf32> to vector<8x128xf32>
    %7 = arith.subf %6, %5 : vector<8x128xf32>
    %8 = math.exp %7 : vector<8x128xf32>
    %c0_6 = arith.constant 0 : index
    %c0_7 = arith.constant 0 : index
    %c0_8 = arith.constant 0 : index
    %9 = vector.load %arg5[%c0_6, %c0_7, %c0_8] : memref<1x8x128xf32, #tpu.memory_space<vmem>>, vector<1x8x128xf32>
    %10 = vector.shape_cast %9 : vector<1x8x128xf32> to vector<8x128xf32>
    %11 = vector.shape_cast %8 : vector<8x128xf32> to vector<1x8x128xf32>
    tpu.vector_store %arg5[%c0_6, %c0_7, %c0_8], %11 {strides = array<i32>} : memref<1x8x128xf32, #tpu.memory_space<vmem>>, vector<1x8x128xf32>,
    return
  }
  func.func @transform_0(%arg0: i32, %arg1: i32) -> (i32, i32, i32) {
    %c0_i32 = arith.constant 0 : i32
    %c0_i32_0 = arith.constant 0 : i32
    return %arg0, %c0_i32, %arg1 : i32, i32, i32
  }
  func.func @transform_1(%arg0: i32, %arg1: i32) -> (i32, i32) {
    %c0_i32 = arith.constant 0 : i32
    %c0_i32_0 = arith.constant 0 : i32
    %c0_i32_1 = arith.constant 0 : i32
    return %c0_i32, %c0_i32_0 : i32, i32
  }
  func.func @transform_2(%arg0: i32, %arg1: i32) -> (i32, i32) {
    %c0_i32 = arith.constant 0 : i32
    %c0_i32_0 = arith.constant 0 : i32
    %c0_i32_1 = arith.constant 0 : i32
    return %c0_i32, %c0_i32_0 : i32, i32
  }
  func.func @transform_3(%arg0: i32, %arg1: i32) -> (i32, i32, i32) {
    %c0_i32 = arith.constant 0 : i32
    %c0_i32_0 = arith.constant 0 : i32
    return %arg0, %c0_i32, %arg1 : i32, i32, i32
  }
}

module attributes {stable_mosaic.version = 11 : i64} {
  func.func @rbf_accum_kernel(%arg0: i32, %arg1: i32, %arg2: memref<1x8x128xf32, #tpu.memory_space<vmem>>, %arg3: memref<48x8xf32, #tpu.memory_space<vmem>>, %arg4: memref<48x1xf32, #tpu.memory_space<vmem>>, %arg5: memref<1x8x128xf32, #tpu.memory_space<vmem>>, %arg6: memref<1x1x8x1xf32, #tpu.memory_space<vmem>>, %arg7: memref<1x1x8x1xf32, #tpu.memory_space<vmem>>) attributes {dimension_semantics = [#tpu.dimension_semantics<parallel>, #tpu.dimension_semantics<parallel>], iteration_bounds = array<i64: 2, 2>, scalar_prefetch = 0 : i64, scratch_operands = 0 : i64, tpu.core_type = #tpu.core_type<tc>, window_params = [{transform_indices = @transform_0, window_bounds = array<i64: 1, 8, 128>}, {pipeline_mode = #tpu.pipeline_mode<synchronous>, transform_indices = @transform_1, window_bounds = array<i64: 48, 8>}, {pipeline_mode = #tpu.pipeline_mode<synchronous>, transform_indices = @transform_2, window_bounds = array<i64: 48, 1>}, {transform_indices = @transform_3, window_bounds = array<i64: 1, 8, 128>}, {transform_indices = @transform_4, window_bounds = array<i64: 1, 1, 8, 1>}, {transform_indices = @transform_5, window_bounds = array<i64: 1, 1, 8, 1>}]} {
    %c0 = arith.constant 0 : index
    %c0_0 = arith.constant 0 : index
    %c0_1 = arith.constant 0 : index
    %0 = vector.load %arg2[%c0, %c0_0, %c0_1] : memref<1x8x128xf32, #tpu.memory_space<vmem>>, vector<1x8x128xf32>
    %1 = vector.shape_cast %0 : vector<1x8x128xf32> to vector<8x128xf32>
    %c0_2 = arith.constant 0 : index
    %c0_3 = arith.constant 0 : index
    %2 = vector.load %arg3[%c0_2, %c0_3] : memref<48x8xf32, #tpu.memory_space<vmem>>, vector<48x8xf32>
    %cst = arith.constant dense<0.000000e+00> : vector<48x128xf32>
    %3 = tpu.matmul %2, %1, %cst {dimension_numbers = #tpu.dot_dimension_numbers<[1], [0], [0], [1], [0, 0, 1, 1], [], []>} : vector<48x8xf32>, vector<8x128xf32>, vector<48x128xf32> -> vector<48x128xf32>
    %c0_4 = arith.constant 0 : index
    %c0_5 = arith.constant 0 : index
    %4 = vector.load %arg4[%c0_4, %c0_5] : memref<48x1xf32, #tpu.memory_space<vmem>>, vector<48x1xf32>
    %5 = vector.broadcast %4 : vector<48x1xf32> to vector<48x128xf32>
    %6 = arith.addf %3, %5 : vector<48x128xf32>
    %cst_6 = arith.constant 5.000000e-01 : f32
    %7 = vector.broadcast %cst_6 : f32 to vector<48x128xf32>
    %8 = arith.mulf %7, %6 : vector<48x128xf32>
    %cst_7 = arith.constant 0.707106769 : f32
    %9 = vector.broadcast %cst_7 : f32 to vector<48x128xf32>
    %10 = arith.mulf %6, %9 : vector<48x128xf32>
    %11 = math.erf %10 : vector<48x128xf32>
    %cst_8 = arith.constant 1.000000e+00 : f32
    %12 = vector.broadcast %cst_8 : f32 to vector<48x128xf32>
    %13 = arith.addf %12, %11 : vector<48x128xf32>
    %14 = arith.mulf %8, %13 : vector<48x128xf32>
    %15 = vector.extract_strided_slice %14 {offsets = [0, 0], sizes = [8, 128], strides = [1, 1]} : vector<48x128xf32> to vector<8x128xf32>
    %16 = vector.extract_strided_slice %14 {offsets = [24, 0], sizes = [8, 128], strides = [1, 1]} : vector<48x128xf32> to vector<8x128xf32>
    %17 = arith.subf %15, %16 : vector<8x128xf32>
    %18 = arith.mulf %17, %17 : vector<8x128xf32>
    %19 = vector.extract_strided_slice %14 {offsets = [8, 0], sizes = [8, 128], strides = [1, 1]} : vector<48x128xf32> to vector<8x128xf32>
    %20 = vector.extract_strided_slice %14 {offsets = [32, 0], sizes = [8, 128], strides = [1, 1]} : vector<48x128xf32> to vector<8x128xf32>
    %21 = arith.subf %19, %20 : vector<8x128xf32>
    %22 = arith.mulf %21, %21 : vector<8x128xf32>
    %23 = arith.addf %18, %22 : vector<8x128xf32>
    %24 = vector.extract_strided_slice %14 {offsets = [16, 0], sizes = [8, 128], strides = [1, 1]} : vector<48x128xf32> to vector<8x128xf32>
    %25 = vector.extract_strided_slice %14 {offsets = [40, 0], sizes = [8, 128], strides = [1, 1]} : vector<48x128xf32> to vector<8x128xf32>
    %26 = arith.subf %24, %25 : vector<8x128xf32>
    %27 = arith.mulf %26, %26 : vector<8x128xf32>
    %28 = arith.addf %23, %27 : vector<8x128xf32>
    %cst_9 = arith.constant 5.000000e-01 : f32
    %29 = vector.broadcast %cst_9 : f32 to vector<8x128xf32>
    %30 = arith.mulf %28, %29 : vector<8x128xf32>
    %c0_10 = arith.constant 0 : index
    %c0_11 = arith.constant 0 : index
    %c0_12 = arith.constant 0 : index
    %31 = vector.load %arg5[%c0_10, %c0_11, %c0_12] : memref<1x8x128xf32, #tpu.memory_space<vmem>>, vector<1x8x128xf32>
    %32 = vector.shape_cast %31 : vector<1x8x128xf32> to vector<8x128xf32>
    %33 = vector.shape_cast %30 : vector<8x128xf32> to vector<1x8x128xf32>
    tpu.vector_store %arg5[%c0_10, %c0_11, %c0_12], %33 {strides = array<i32>} : memref<1x8x128xf32, #tpu.memory_space<vmem>>, vector<1x8x128xf32>,
    %cst_13 = arith.constant dense<0.000000e+00> : vector<8xf32>
    %34 = vector.multi_reduction <add>, %30, %cst_13 [1] : vector<8x128xf32> to vector<8xf32>
    %35 = vector.shape_cast %34 : vector<8xf32> to vector<8x1xf32>
    %cst_14 = arith.constant 7.812500e-03 : f32
    %36 = vector.broadcast %cst_14 : f32 to vector<8x1xf32>
    %37 = arith.mulf %35, %36 : vector<8x1xf32>
    %38 = vector.broadcast %37 : vector<8x1xf32> to vector<8x128xf32>
    %39 = arith.subf %30, %38 : vector<8x128xf32>
    %c0_15 = arith.constant 0 : index
    %c0_16 = arith.constant 0 : index
    %c0_17 = arith.constant 0 : index
    %c0_18 = arith.constant 0 : index
    %40 = vector.load %arg6[%c0_15, %c0_16, %c0_17, %c0_18] : memref<1x1x8x1xf32, #tpu.memory_space<vmem>>, vector<1x1x8x1xf32>
    %41 = vector.shape_cast %40 : vector<1x1x8x1xf32> to vector<8x1xf32>
    %42 = vector.shape_cast %35 : vector<8x1xf32> to vector<1x1x8x1xf32>
    tpu.vector_store %arg6[%c0_15, %c0_16, %c0_17, %c0_18], %42 {strides = array<i32>} : memref<1x1x8x1xf32, #tpu.memory_space<vmem>>, vector<1x1x8x1xf32>,
    %43 = arith.mulf %39, %39 : vector<8x128xf32>
    %cst_19 = arith.constant dense<0.000000e+00> : vector<8xf32>
    %44 = vector.multi_reduction <add>, %43, %cst_19 [1] : vector<8x128xf32> to vector<8xf32>
    %45 = vector.shape_cast %44 : vector<8xf32> to vector<8x1xf32>
    %c0_20 = arith.constant 0 : index
    %c0_21 = arith.constant 0 : index
    %c0_22 = arith.constant 0 : index
    %c0_23 = arith.constant 0 : index
    %46 = vector.load %arg7[%c0_20, %c0_21, %c0_22, %c0_23] : memref<1x1x8x1xf32, #tpu.memory_space<vmem>>, vector<1x1x8x1xf32>
    %47 = vector.shape_cast %46 : vector<1x1x8x1xf32> to vector<8x1xf32>
    %48 = vector.shape_cast %45 : vector<8x1xf32> to vector<1x1x8x1xf32>
    tpu.vector_store %arg7[%c0_20, %c0_21, %c0_22, %c0_23], %48 {strides = array<i32>} : memref<1x1x8x1xf32, #tpu.memory_space<vmem>>, vector<1x1x8x1xf32>,
    return
  }
  func.func @transform_0(%arg0: i32, %arg1: i32) -> (i32, i32, i32) {
    %c0_i32 = arith.constant 0 : i32
    %c0_i32_0 = arith.constant 0 : i32
    return %arg0, %c0_i32, %arg1 : i32, i32, i32
  }
  func.func @transform_1(%arg0: i32, %arg1: i32) -> (i32, i32) {
    %c0_i32 = arith.constant 0 : i32
    %c0_i32_0 = arith.constant 0 : i32
    %c0_i32_1 = arith.constant 0 : i32
    return %c0_i32, %c0_i32_0 : i32, i32
  }
  func.func @transform_2(%arg0: i32, %arg1: i32) -> (i32, i32) {
    %c0_i32 = arith.constant 0 : i32
    %c0_i32_0 = arith.constant 0 : i32
    %c0_i32_1 = arith.constant 0 : i32
    return %c0_i32, %c0_i32_0 : i32, i32
  }
  func.func @transform_3(%arg0: i32, %arg1: i32) -> (i32, i32, i32) {
    %c0_i32 = arith.constant 0 : i32
    %c0_i32_0 = arith.constant 0 : i32
    return %arg0, %c0_i32, %arg1 : i32, i32, i32
  }
  func.func @transform_4(%arg0: i32, %arg1: i32) -> (i32, i32, i32, i32) {
    %c0_i32 = arith.constant 0 : i32
    %c0_i32_0 = arith.constant 0 : i32
    %c0_i32_1 = arith.constant 0 : i32
    return %arg0, %arg1, %c0_i32, %c0_i32_0 : i32, i32, i32, i32
  }
  func.func @transform_5(%arg0: i32, %arg1: i32) -> (i32, i32, i32, i32) {
    %c0_i32 = arith.constant 0 : i32
    %c0_i32_0 = arith.constant 0 : i32
    %c0_i32_1 = arith.constant 0 : i32
    return %arg0, %arg1, %c0_i32, %c0_i32_0 : i32, i32, i32, i32
  }
}

</mosaic_0001>

<bundles_post_ra>
// kernel: mul.9
= control target key start
LH: loop header
LB: loop body
LE: loop exit
PB: predicated region body
PF: predicated region fallthrough
CT: control target
= control target key end

     0   :  { %s34_s0 = inlined_call_operand.vmem [shape: f32[8,1], index: 0, kind: input, shape index: {}]   ;;  %s35_s1 = inlined_call_operand.vmem [shape: f32[8,1], index: 1, kind: input, shape index: {}]   ;;  %s36_s2 = inlined_call_operand.vmem [shape: f32[8,1], index: 2, kind: output, shape index: {}]  }
   0x1   :  { %v3_v0 = vld [vmem:[%s34_s0] sm:$0xff] }
   0x2   :  { %v4_v1 = vld [vmem:[%s35_s1] sm:$0xff] }
   0x3   :  { %v7_v2 = vmul.f32 %v4_v1, %v3_v0 }
   0x5   :  { %9 = vst [vmem:[%s36_s2] sm:$0xff] %v7_v2 }

// kernel: rbf_kernel_forward.3
= control target key start
LH: loop header
LB: loop body
LE: loop exit
PB: predicated region body
PF: predicated region fallthrough
CT: control target
= control target key end

     0   :  { %s422_s12 = smov 0   ;;  %s424_s13 = smov 0   ;;  %s479_s0 = inlined_call_operand.vmem [shape: f32[2,8,256], index: 0, kind: input, shape index: {}, may-alias: {0,3}]   ;;  %s480_s1 = inlined_call_operand.vmem [shape: f32[8,1], index: 1, kind: input, shape index: {}]   ;;  %s481_s2 = inlined_call_operand.vmem [shape: f32[8,1], index: 2, kind: input, shape index: {}]   ;;  %s482_s3 = inlined_call_operand.vmem [shape: f32[2,8,256], index: 3, kind: output, shape index: {}, may-alias: {0,3}]  }
   0x1   :  { %s426_s14 = smov 0   ;;  %s428_s15 = smov 0  }
   0x2   :  { %s430_s16 = smov 0  }
   0x3 LB: > { %s22_s17 = sadd.s32 1, %s391_s14  ;;  %s25_s18 = sadd.s32 1, %s395_s15  ;;  %s399_s16 = sphi %s430_s16, %s13_s16   ;;  %s395_s15 = sphi %s428_s15, %s486_s15   ;;  %s391_s14 = sphi %s426_s14, %s485_s14   ;;  %s387_s13 = sphi %s424_s13, %s484_s13   ;;  %s383_s12 = sphi %s422_s12, %s483_s12  }
   0x4   : > { %p23_p0 = scmp.ge.s32.totalorder %s22_s17, 2  ;;  %p310_p1 = scmp.ge.s32.totalorder %s399_s16, 1 }
   0x5   : > { %p156_p2 = scmp.lt.s32.totalorder %s399_s16, 5 }
   0x6   : > { %s488_s17 = smov (%p23_p0, %s22_s17), 0  ;;  %s490_s18 = smov (!%p23_p0, %s25_s18), %s395_s15 }
   0x7   : > { %p157_p3 = pnand %p310_p1, %p156_p2  ;;  %p27_p4 = scmp.ge.s32.totalorder %s490_s18, 2 }
   0x8   : > { %v204_v0 = vld [vmem:[%s480_s1] sm:$0xff] (!%p157_p3)  ;;  %v401_v1 = vmov (!%p157_p3), 0   ;;  %p186_p5 = scmp.lt.s32.totalorder (!%p157_p3), %s387_s13, 1  ;;  %p188_p6 = scmp.lt.s32.totalorder (!%p157_p3), %s383_s12, 1 }
   0x9   : > { %s492_s18 = smov (%p27_p4, %s490_s18), 0  ;;  %160 = sbr.rel (%p157_p3) target bundleno = 159 (0x9f), region = 32 }
   0xa   : > { %358 = vset.pattern.permute.xlu0 (!%p157_p3), %v401_v1  ;;  %v202_v2 = vld [vmem:[%s481_s2] sm:$0xff] (!%p157_p3) }
   0xb   : > { %207 = vperm.xlu0 (!%p157_p3), %358, %v204_v0  }
   0xf   : > { %213 = vperm.xlu0 (!%p157_p3), %358, %v202_v2  }
  0x10   : > { %s494_s13 = smov (!%p186_p5, %s387_s13), 1  ;;  %s496_s12 = smov (!%p188_p6, %s383_s12), 1 }
  0x11   : > { %s311_s23 = sshll.u32 %s494_s13, 1 }
  0x12   : > { %s191_s24 = sadd.s32 %s311_s23, %s496_s12 }
  0x13   : > { %s312_s25 = sshll.u32 %s191_s24, 3 }
  0x14   : > { %s193_s28 = scalar_lea.vmem %s479_s0, %s312_s25  ;;  %s201_s4 = scalar_lea.vmem %s482_s3, %s312_s25 }
  0x15   : > { %v203_v4 = vld [vmem:[%s193_s28] sm:$0xff] }
  0x8a   : > { %v208_v3 = vpop.permute.xlu0 %207 }
  0x8b   : > { %v210_v5 = vmul.f32 %v208_v3, %v203_v4 }
  0x8e   : > { %v214_v6 = vpop.permute.xlu0 %213 }
  0x8f   : > { %v216_v7 = vsub.f32 %v214_v6, %v210_v5 }
  0x91   : > { %v217_v8 = vmul.f32 1.442695, %v216_v7 }
  0x93   : > { %359 = vpow2.f32 %v217_v8 }
  0x9d   : > { %v360_v9 = vpop.eup %359 }
  0x9e   : > { %219 = vst [vmem:[%s201_s4] sm:$0xff] %v360_v9 }
  0x9f PF: > { %s13_s16 = sadd.s32 1, %s399_s16   ;;  %s483_s12 = smov %s391_s14 }
  0xa0   : > { %p10_p7 = scmp.ge.s32.totalorder %s13_s16, 6   ;;  %s484_s13 = smov %s395_s15 }
  0xa1   : > { %s485_s14 = smov %s488_s17  ;;  %s486_s15 = smov %s492_s18 }
  0xa2   :  { %12 = sbr.rel (!%p10_p7) target bundleno = 3 (0x3), region = 62 }

// kernel: rbf_kernel_forward.2
= control target key start
LH: loop header
LB: loop body
LE: loop exit
PB: predicated region body
PF: predicated region fallthrough
CT: control target
= control target key end

     0   :  { %s851_s18 = smov 0   ;;  %s853_s19 = smov 0   ;;  %s956_s0 = inlined_call_operand.vmem [shape: f32[2,8,256], index: 0, kind: input, shape index: {}]   ;;  %s957_s1 = inlined_call_operand.vmem [shape: f32[48,8], index: 1, kind: input, shape index: {}]   ;;  %s958_s2 = inlined_call_operand.vmem [shape: f32[48,1], index: 2, kind: input, shape index: {}]   ;;  %s959_s3 = inlined_call_operand.vmem [shape: f32[2,8,256], index: 3, kind: output, shape index: {0}]   ;;  %s960_s4 = inlined_call_operand.vmem [shape: f32[2,2,8,1], index: 4, kind: output, shape index: {1}]   ;;  %s961_s5 = inlined_call_operand.vmem [shape: f32[2,2,8,1], index: 5, kind: output, shape index: {2}]  }
   0x1   :  { %s855_s20 = smov 0   ;;  %s857_s21 = smov 0  }
   0x2   :  { %s859_s22 = smov 0  }
   0x3 LB: > { %s25_s23 = sadd.s32 1, %s810_s20  ;;  %s28_s24 = sadd.s32 1, %s814_s21  ;;  %s818_s22 = sphi %s859_s22, %s16_s22   ;;  %s814_s21 = sphi %s857_s21, %s965_s21   ;;  %s810_s20 = sphi %s855_s20, %s964_s20   ;;  %s806_s19 = sphi %s853_s19, %s963_s19   ;;  %s802_s18 = sphi %s851_s18, %s962_s18  }
   0x4   : > { %p26_p0 = scmp.ge.s32.totalorder %s25_s23, 2  ;;  %p688_p1 = scmp.ge.s32.totalorder %s818_s22, 1 }
   0x5   : > { %p215_p2 = scmp.lt.s32.totalorder %s818_s22, 5 }
   0x6   : > { %s967_s23 = smov (%p26_p0, %s25_s23), 0  ;;  %s969_s24 = smov (!%p26_p0, %s28_s24), %s814_s21 }
   0x7   : > { %p216_p3 = pnand %p688_p1, %p215_p2  ;;  %p30_p4 = scmp.ge.s32.totalorder %s969_s24, 2 }
   0x8   : > { %p265_p5 = scmp.lt.s32.totalorder (!%p216_p3), %s806_s19, 1  ;;  %p267_p6 = scmp.lt.s32.totalorder (!%p216_p3), %s802_s18, 1  ;;  %v298_v0 = vld [vmem:[%s957_s1] sm:$0xff] (!%p216_p3)  ;;  %vm340_vm0 = vcmask (!%p216_p3), 64512   ;;  %v300_v1 = vld [vmem:[%s957_s1 + $0x10] sm:$0xff] (!%p216_p3)  ;;  %v820_v2 = vmov (!%p216_p3), 0  }
   0x9   : > { %s971_s24 = smov (%p30_p4, %s969_s24), 0  ;;  %219 = sbr.rel (%p216_p3) target bundleno = 561 (0x231), region = 32 }
   0xa   : > { %714 = vmatprep.mubr.msk.f32.mxu0 (!%p216_p3), %vm340_vm0, %v298_v0  ;;  %717 = vmatprep.mubr.msk.f32.mxu1 (!%p216_p3), %vm340_vm0, %v300_v1  ;;  %v307_v3 = vld [vmem:[%s958_s2 + $0x18] sm:$0xff] (!%p216_p3)  ;;  %v304_v4 = vld [vmem:[%s958_s2] sm:$0xff] (!%p216_p3)  ;;  %v305_v6 = vld [vmem:[%s958_s2 + $0x8] sm:$0xff] (!%p216_p3)  ;;  %vm498_vm1 = vcmask (!%p216_p3), 7168  }
   0xb   : > { %767 = vset.pattern.permute.xlu1 (!%p216_p3), %v820_v2  ;;  %766 = vset.pattern.permute.xlu0 (!%p216_p3), %v820_v2  ;;  %v308_v5 = vld [vmem:[%s958_s2 + $0x20] sm:$0xff] (!%p216_p3)  ;;  %v299_v8 = vld [vmem:[%s957_s1 + $0x8] sm:$0xff] (!%p216_p3)  ;;  %v301_v9 = vld [vmem:[%s957_s1 + $0x18] sm:$0xff] (!%p216_p3) }
   0xc   : > { %327 = vperm.xlu1 (!%p216_p3), %767, %v307_v3   ;;  %312 = vperm.xlu0 (!%p216_p3), %766, %v304_v4   ;;  %v302_v10 = vld [vmem:[%s957_s1 + $0x20] sm:$0xff] (!%p216_p3)  ;;  %v309_v11 = vld [vmem:[%s958_s2 + $0x28] sm:$0xff] (!%p216_p3)  ;;  %v306_v12 = vld [vmem:[%s958_s2 + $0x10] sm:$0xff] (!%p216_p3) }
   0xd   : > { %v303_v13 = vld [vmem:[%s957_s1 + $0x28] sm:$0xff] (!%p216_p3) }
  0x10   : > { %s973_s19 = smov (!%p265_p5, %s806_s19), 1  ;;  %s975_s18 = smov (!%p267_p6, %s802_s18), 1  ;;  %332 = vperm.xlu1 %767, %v308_v5   ;;  %317 = vperm.xlu0 %766, %v305_v6  }
  0x11   : > { %s689_s8 = sshll.u32 %s973_s19, 1 }
  0x12   : > { %s270_s13 = sadd.s32 %s689_s8, %s975_s18 }
  0x13   : > { %s901_s14 = sshll.u32 %s270_s13, 3 }
  0x14   : > { %s272_s17 = scalar_lea.vmem %s956_s0, %s901_s14  ;;  %337 = vperm.xlu1 %767, %v309_v11   ;;  %322 = vperm.xlu0 %766, %v306_v12   ;;  %s280_s12 = scalar_lea.vmem %s959_s3, %s901_s14 }
  0x15   : > { %v297_v7 = vld [vmem:[%s272_s17] sm:$0xff]  ;;  %s288_s16 = scalar_lea.vmem %s960_s4, %s901_s14  ;;  %s296_s25 = scalar_lea.vmem %s961_s5, %s901_s14 }
  0x16   : > { %712 = vmatprep.subr.mxu0 %v297_v7  ;;  %723 = vmatprep.subr.mxu1 %v297_v7 }
  0x17   : > { %713 = vmatpush3.msra.mxu0 %v297_v7  ;;  %724 = vmatpush3.msra.mxu1 %v297_v7 }
  0x18   : > { %715 = vmatmul.mubr.msk.f32.vlgmr.msra.gmra.mrb[0].mxu0 %vm340_vm0, %v299_v8  ;;  %718 = vmatmul.mubr.msk.f32.vlgmr.msra.gmra.mrb[0].mxu1 %vm340_vm0, %v301_v9 }
  0x19   : > { %720 = vmatprep.mubr.msk.f32.mxu1 %vm340_vm0, %v302_v10 }
  0x1c   : > { %721 = vmatmul.mubr.msk.f32.gmra.mrb[2].mxu1 %vm340_vm0, %v303_v13 }
  0x8b   : > { %v313_v14 = vpop.permute.xlu0 %312  ;;  %v328_v15 = vpop.permute.xlu1 %327 }
  0x8f   : > { %v318_v16 = vpop.permute.xlu0 %317  ;;  %v333_v17 = vpop.permute.xlu1 %332 }
  0x93   : > { %v323_v18 = vpop.permute.xlu0 %322  ;;  %v338_v31 = vpop.permute.xlu1 %337 }
  0xeb   : > { %v716_v19 = vpop.f32.mrb[0].mxu0  ;;  %v719_v20 = vpop.f32.mrb[0].mxu1 }
  0xec   : > { %v431_v21 = vadd.f32 %v716_v19, %v318_v16  ;;  %v441_v22 = vadd.f32 %v719_v20, %v328_v15  ;;  %v425_v23 = vpop.f32.mrb[1].mxu0  ;;  %v435_v24 = vpop.f32.mrb[1].mxu1 }
  0xed   : > { %v426_v25 = vadd.f32 %v425_v23, %v313_v14  ;;  %v436_v26 = vadd.f32 %v435_v24, %v323_v18 }
  0xee   : > { %v461_v27 = vmul.f32 0.70710677, %v431_v21  ;;  %v463_v28 = vmul.f32 0.70710677, %v441_v22  ;;  %v457_v41 = vmul.f32 0.5, %v441_v22  ;;  %v455_v55 = vmul.f32 0.5, %v431_v21 }
  0xef   : > { %v460_v29 = vmul.f32 0.70710677, %v426_v25  ;;  %v462_v30 = vmul.f32 0.70710677, %v436_v26  ;;  %v722_v32 = vpop.f32.mrb[2].mxu1  ;;  %v454_v44 = vmul.f32 0.5, %v426_v25 }
  0xf0   : > { %768 = verf.f32 %v461_v27  ;;  %v451_v33 = vadd.f32 %v722_v32, %v338_v31  ;;  %v445_v34 = vpop.f32.mrb[3].mxu1  ;;  %v456_v52 = vmul.f32 0.5, %v436_v26 }
  0xf1   : > { %770 = verf.f32 %v463_v28  ;;  %v446_v35 = vadd.f32 %v445_v34, %v333_v17 }
  0xf2   : > { %772 = verf.f32 %v460_v29  ;;  %v465_v36 = vmul.f32 0.70710677, %v451_v33  ;;  %v459_v53 = vmul.f32 0.5, %v451_v33 }
  0xf3   : > { %774 = verf.f32 %v462_v30  ;;  %v464_v37 = vmul.f32 0.70710677, %v446_v35  ;;  %v458_v57 = vmul.f32 0.5, %v446_v35 }
  0xf4   : > { %776 = verf.f32 %v465_v36 }
  0xf5   : > { %778 = verf.f32 %v464_v37 }
  0xfa   : > { %v769_v38 = vpop.eup %768 }
  0xfb   : > { %v771_v39 = vpop.eup %770  ;;  %v473_v49 = vadd.f32 1.0, %v769_v38 }
  0xfc   : > { %v773_v40 = vpop.eup %772  ;;  %v475_v42 = vadd.f32 1.0, %v771_v39 }
  0xfd   : > { %v775_v43 = vpop.eup %774  ;;  %v472_v45 = vadd.f32 1.0, %v773_v40  ;;  %v479_v61 = vmul.f32 %v473_v49, %v455_v55 }
  0xfe   : > { %v481_v46 = vmul.f32 %v475_v42, %v457_v41  ;;  %v474_v47 = vadd.f32 1.0, %v775_v43  ;;  %v777_v48 = vpop.eup %776 }
  0xff   : > { %v478_v50 = vmul.f32 %v472_v45, %v454_v44  ;;  %v779_v51 = vpop.eup %778  ;;  %v477_v54 = vadd.f32 1.0, %v777_v48 }
 0x100   : > { %v476_v58 = vadd.f32 1.0, %v779_v51  ;;  %v480_v59 = vmul.f32 %v474_v47, %v456_v52 }
 0x101   : > { %v484_v56 = vsub.f32 %v478_v50, %v481_v46  ;;  %v483_v60 = vmul.f32 %v477_v54, %v459_v53 }
 0x102   : > { %v482_v62 = vmul.f32 %v476_v58, %v458_v57 }
 0x103   : > { %v489_v63 = vsub.f32 %v480_v59, %v483_v60  ;;  %v485_v1 = vmul.f32 %v484_v56, %v484_v56 }
 0x104   : > { %v486_v0 = vsub.f32 %v479_v61, %v482_v62 }
 0x105   : > { %v490_v4 = vmul.f32 %v489_v63, %v489_v63 }
 0x106   : > { %v487_v2 = vmul.f32 %v486_v0, %v486_v0 }
 0x108   : > { %v488_v3 = vadd.f32 %v487_v2, %v485_v1 }
 0x10a   : > { %v491_v5 = vadd.f32 %v490_v4, %v488_v3 }
 0x10c   : > { %v492_v6 = vmul.f32 0.5, %v491_v5 }
 0x10e   : > { %494 = vadd.xlane.f32.xlu0 %v492_v6  ;;  %493 = vst [vmem:[%s280_s12] sm:$0xff] %v492_v6 }
 0x19b   : > { %v495_v7 = vpop.xlane.xlu0 %494 }
 0x19c   : > { %v496_v8 = vmul.f32 0.0078125, %v495_v7  ;;  %499 = vst.msk [vmem:[%s288_s16] sm:$0xff] %vm498_vm1, %v495_v7 }
 0x19e   : > { %v497_v9 = vsub.f32 %v492_v6, %v496_v8 }
 0x1a0   : > { %v500_v10 = vmul.f32 %v497_v9, %v497_v9 }
 0x1a2   : > { %501 = vadd.xlane.f32.xlu1 %v500_v10 }
 0x22f   : > { %v502_v11 = vpop.xlane.xlu1 %501 }
 0x230   : > { %503 = vst.msk [vmem:[%s296_s25] sm:$0xff] %vm498_vm1, %v502_v11 }
 0x231 PF: > { %s16_s22 = sadd.s32 1, %s818_s22   ;;  %s962_s18 = smov %s810_s20 }
 0x232   : > { %p13_p7 = scmp.ge.s32.totalorder %s16_s22, 6   ;;  %s963_s19 = smov %s814_s21 }
 0x233   : > { %s964_s20 = smov %s967_s23  ;;  %s965_s21 = smov %s971_s24 }
 0x234   :  { %15 = sbr.rel (!%p13_p7) target bundleno = 3 (0x3), region = 86 }

</bundles_post_ra>
